<compile_context>
chip_gen: v6e
topology: v6e:2x2x1
jax: 0.10.0
libtpu: 0.0.40
codegen_flags: <defaults>
</compile_context>

<pallas_src>
import functools

import jax
import jax.numpy as jnp
from jax.experimental import pallas as pl
from jax.experimental.pallas import tpu as pltpu

ATT_DIM = 256      # attention dim (== channels of BaseNet output)
N_CLASSES = 5      # Linear(256, 5)
PAD = 128          # lane-dense padding of the head output
SCALE = ATT_DIM ** (-0.5)


def ft_loss_kernel(x_ref, w_ref, v_ref, lw_ref, lb_ref, out_ref, *, seq, seq_valid):
    # x_ref  : (BB*seq, C) bf16 -- BB batch elements, channels-last row slab
    # w_ref  : (C, A)      bf16 -- attention W  (K = N = 256: full MXU tile)
    # v_ref  : (1, A)      f32  -- attention V as a row, pre-scaled by 1/sqrt(A)
    # lw_ref : (C, PAD)    bf16 -- Linear weight^T, zero-padded to 128 lanes
    # lb_ref : (1, PAD)    f32  -- Linear bias, zero-padded to 128 lanes
    # out_ref: (BB, PAD)   f32
    nb = out_ref.shape[0]
    chans = x_ref.shape[-1]

    x = x_ref[...]                                                        # (R, C) bf16

    # h = tanh(x @ W): bf16 MXU matmul with f32 accumulation, tanh in f32 (EUP).
    h = jnp.tanh(jnp.dot(x, w_ref[...],
                         preferred_element_type=jnp.float32))            # (R, A) f32

    # e = h @ (V * scale): done as VPU multiply + XLU lane reduce -- an N=1
    # MXU matmul would waste an entire 256-wide weight tile.
    s = jnp.sum(h * v_ref[...], axis=-1, keepdims=True)                  # (R, 1) f32

    # Softmax over time per batch element via a sublane-aligned segmented
    # reduce (seq % 8 == 0).  Padded time steps are masked out; the per-batch
    # max is subtracted before exp (cancels exactly in num/den).
    s3 = s.reshape(nb, seq, 1)                                            # (nb, seq, 1)
    if seq_valid != seq:
        t_idx = jax.lax.broadcasted_iota(jnp.int32, (nb, seq, 1), 1)
        s3 = jnp.where(t_idx < seq_valid, s3, jnp.float32(-1e30))
    m = jnp.max(s3, axis=1, keepdims=True)                                # (nb, 1, 1)
    w_exp = jnp.exp(s3 - m)                                               # (nb, seq, 1) f32

    x3 = x.astype(jnp.float32).reshape(nb, seq, chans)                    # (nb, seq, C) f32
    num = jnp.sum(x3 * w_exp, axis=1)                                     # (nb, C)
    den = jnp.sum(w_exp, axis=1)                                          # (nb, 1)
    feat = num * pl.reciprocal(den, approx=True)                          # (nb, C)

    # Final linear head: bf16 MXU matmul, 128 lanes -> unmasked stores.
    logits = jnp.dot(feat.astype(jnp.bfloat16), lw_ref[...],
                     preferred_element_type=jnp.float32) + lb_ref[...]    # (nb, PAD)
    out_ref[...] = logits.astype(out_ref.dtype)


def _choose_block_b(batch, seq):
    """Pick BB so BB*seq ~ 2048 rows, BB a multiple of 8 when possible, and
    the grid keeps >= 2 blocks (v7x has 2 TensorCores)."""
    target_rows = 2048
    bb = max(1, target_rows // max(seq, 1))
    if bb >= 8:
        bb = (bb // 8) * 8
    bb = min(bb, batch)
    if batch > 1:
        bb = min(bb, -(-batch // 2))
    return max(bb, 1)


def ft_loss_forward(x_bct, att_w, att_v, lin_w, lin_b):
    """x_bct: (B, C=256, T) BaseNet feature map (channel-first, as in torch)."""
    B, C, T = x_bct.shape
    assert C == ATT_DIM

    T_pad = -(-T // 8) * 8                     # time padded to sublane multiple
    bb = _choose_block_b(B, T_pad)
    n_blocks = -(-B // bb)
    B_pad = n_blocks * bb

    x = x_bct
    if T_pad != T:
        x = jnp.pad(x, ((0, 0), (0, 0), (0, T_pad - T)))
    if B_pad != B:
        x = jnp.pad(x, ((0, B_pad - B), (0, 0), (0, 0)))

    # (B, C, T) -> (B, T, C) + bf16 cast: one fused XLA pass (write is bf16).
    x_rows = jnp.transpose(x, (0, 2, 1)).astype(jnp.bfloat16).reshape(
        n_blocks, bb * T_pad, C)

    # parameter prep (tiny, one-time)
    w_bf = att_w.astype(jnp.bfloat16)
    v_row = (att_v.reshape(1, ATT_DIM) * SCALE).astype(jnp.float32)
    lw_pad = jnp.zeros((C, PAD), jnp.bfloat16).at[:, :N_CLASSES].set(
        lin_w.T.astype(jnp.bfloat16))
    lb_pad = jnp.zeros((1, PAD), jnp.float32).at[0, :N_CLASSES].set(
        lin_b.astype(jnp.float32))

    kernel = functools.partial(ft_loss_kernel, seq=T_pad, seq_valid=T)

    grid_spec = pltpu.PrefetchScalarGridSpec(
        num_scalar_prefetch=0,
        grid=(n_blocks,),
        in_specs=[
            pl.BlockSpec((None, bb * T_pad, C), lambda b: (b, 0, 0)),   # x slab
            pl.BlockSpec((C, ATT_DIM), lambda b: (0, 0)),               # W (bf16)
            pl.BlockSpec((1, ATT_DIM), lambda b: (0, 0)),               # V row (f32)
            pl.BlockSpec((C, PAD), lambda b: (0, 0)),                   # lin W^T (bf16)
            pl.BlockSpec((1, PAD), lambda b: (0, 0)),                   # lin bias (f32)
        ],
        out_specs=pl.BlockSpec((None, bb, PAD), lambda b: (b, 0, 0)),
    )

    out = pl.pallas_call(
        kernel,
        out_shape=jax.ShapeDtypeStruct((n_blocks, bb, PAD), jnp.float32),
        grid_spec=grid_spec,
        compiler_params=pltpu.CompilerParams(dimension_semantics=("parallel",)),
    )(x_rows, w_bf, v_row, lw_pad, lb_pad)

    return out.reshape(B_pad, PAD)[:B, :N_CLASSES]


def reference_forward(x_bct, att_w, att_v, lin_w, lin_b):
    """Pure-JAX re-implementation of the torch forward (for checking)."""
    x = jnp.transpose(x_bct, (0, 2, 1))                       # (B, T, C)
    e = jnp.matmul(x, att_w)                                  # (B, T, A)
    e = jnp.matmul(jnp.tanh(e), att_v) * SCALE                # (B, T, 1)
    n1 = jnp.exp(e)
    n2 = jnp.sum(jnp.exp(e), axis=1, keepdims=True)
    alpha = n1 / n2
    feat = jnp.sum(alpha * x, axis=1)                         # (B, C)
    return feat @ lin_w.T + lin_b                             # (B, 5)


if __name__ == "__main__":
    key = jax.random.PRNGKey(0)
    k_x, k_w, k_v, k_lw, k_lb = jax.random.split(key, 5)

    B, C, T = 4, 256, 16                                       # small test shapes
    x = jax.random.normal(k_x, (B, C, T), dtype=jnp.float32)   # BaseNet features

    # attention params: nn.Parameter(torch.randn(...)) -> standard normal
    att_w = jax.random.normal(k_w, (256, ATT_DIM), dtype=jnp.float32)
    att_v = jax.random.normal(k_v, (ATT_DIM, 1), dtype=jnp.float32)

    # nn.Linear(256, 5)-style init
    bound = 1.0 / (256.0 ** 0.5)
    lin_w = jax.random.uniform(k_lw, (N_CLASSES, 256), jnp.float32, -bound, bound)
    lin_b = jax.random.uniform(k_lb, (N_CLASSES,), jnp.float32, -bound, bound)

    out = ft_loss_forward(x, att_w, att_v, lin_w, lin_b)
    out = jax.block_until_ready(out)

    # Reference evaluated with the same bf16-rounded MXU operands the kernel
    # consumes (x, W, lin_w), everything else f32.
    bf = lambda a: a.astype(jnp.bfloat16).astype(jnp.float32)
    ref = reference_forward(bf(x), bf(att_w), att_v, bf(lin_w), lin_b)

    assert out.shape == (B, N_CLASSES)
    err = float(jnp.max(jnp.abs(out - ref)))
    assert jnp.allclose(out, ref, atol=1e-2, rtol=1e-2), (err, out, ref)

    print("KERNEL_OK")
</pallas_src>

<mosaic_0001>
module attributes {stable_mosaic.version = 11 : i64} {
  func.func @ft_loss_kernel(%arg0: i32, %arg1: memref<1x32x256xbf16, #tpu.memory_space<vmem>>, %arg2: memref<256x256xbf16, #tpu.memory_space<vmem>>, %arg3: memref<1x256xf32, #tpu.memory_space<vmem>>, %arg4: memref<256x128xbf16, #tpu.memory_space<vmem>>, %arg5: memref<1x128xf32, #tpu.memory_space<vmem>>, %arg6: memref<1x2x128xf32, #tpu.memory_space<vmem>>) attributes {dimension_semantics = [#tpu.dimension_semantics<parallel>], iteration_bounds = array<i64: 2>, scalar_prefetch = 0 : i64, scratch_operands = 0 : i64, tpu.core_type = #tpu.core_type<tc>, window_params = [{transform_indices = @transform_0, window_bounds = array<i64: 1, 32, 256>}, {pipeline_mode = #tpu.pipeline_mode<synchronous>, transform_indices = @transform_1, window_bounds = array<i64: 256, 256>}, {pipeline_mode = #tpu.pipeline_mode<synchronous>, transform_indices = @transform_2, window_bounds = array<i64: 1, 256>}, {pipeline_mode = #tpu.pipeline_mode<synchronous>, transform_indices = @transform_3, window_bounds = array<i64: 256, 128>}, {pipeline_mode = #tpu.pipeline_mode<synchronous>, transform_indices = @transform_4, window_bounds = array<i64: 1, 128>}, {transform_indices = @transform_5, window_bounds = array<i64: 1, 2, 128>}]} {
    %c0 = arith.constant 0 : index
    %c0_0 = arith.constant 0 : index
    %c0_1 = arith.constant 0 : index
    %0 = vector.load %arg1[%c0, %c0_0, %c0_1] : memref<1x32x256xbf16, #tpu.memory_space<vmem>>, vector<1x32x256xbf16>
    %1 = vector.shape_cast %0 : vector<1x32x256xbf16> to vector<32x256xbf16>
    %c0_2 = arith.constant 0 : index
    %c0_3 = arith.constant 0 : index
    %2 = vector.load %arg2[%c0_2, %c0_3] : memref<256x256xbf16, #tpu.memory_space<vmem>>, vector<256x256xbf16>
    %cst = arith.constant dense<0.000000e+00> : vector<32x256xf32>
    %3 = tpu.matmul %1, %2, %cst {dimension_numbers = #tpu.dot_dimension_numbers<[1], [0], [0], [1], [0, 0, 1, 1], [], []>} : vector<32x256xbf16>, vector<256x256xbf16>, vector<32x256xf32> -> vector<32x256xf32>
    %4 = math.tanh %3 : vector<32x256xf32>
    %c0_4 = arith.constant 0 : index
    %c0_5 = arith.constant 0 : index
    %5 = vector.load %arg3[%c0_4, %c0_5] : memref<1x256xf32, #tpu.memory_space<vmem>>, vector<1x256xf32>
    %6 = vector.broadcast %5 : vector<1x256xf32> to vector<32x256xf32>
    %7 = arith.mulf %4, %6 : vector<32x256xf32>
    %cst_6 = arith.constant dense<0.000000e+00> : vector<32xf32>
    %8 = vector.multi_reduction <add>, %7, %cst_6 [1] : vector<32x256xf32> to vector<32xf32>
    %9 = vector.shape_cast %8 : vector<32xf32> to vector<32x1xf32>
    %10 = vector.shape_cast %9 : vector<32x1xf32> to vector<2x16x1xf32>
    %cst_7 = arith.constant dense<0xFF800000> : vector<2x1xf32>
    %11 = vector.multi_reduction <maximumf>, %10, %cst_7 [1] : vector<2x16x1xf32> to vector<2x1xf32>
    %12 = vector.shape_cast %11 : vector<2x1xf32> to vector<2x1x1xf32>
    %13 = vector.broadcast %12 : vector<2x1x1xf32> to vector<2x16x1xf32>
    %14 = arith.subf %10, %13 : vector<2x16x1xf32>
    %15 = math.exp %14 : vector<2x16x1xf32>
    %16 = arith.extf %1 : vector<32x256xbf16> to vector<32x256xf32>
    %17 = vector.shape_cast %16 : vector<32x256xf32> to vector<2x16x256xf32>
    %18 = vector.broadcast %15 : vector<2x16x1xf32> to vector<2x16x256xf32>
    %19 = arith.mulf %17, %18 : vector<2x16x256xf32>
    %cst_8 = arith.constant dense<0.000000e+00> : vector<2x256xf32>
    %20 = vector.multi_reduction <add>, %19, %cst_8 [1] : vector<2x16x256xf32> to vector<2x256xf32>
    %cst_9 = arith.constant dense<0.000000e+00> : vector<2x1xf32>
    %21 = vector.multi_reduction <add>, %15, %cst_9 [1] : vector<2x16x1xf32> to vector<2x1xf32>
    %22 = tpu.reciprocal %21 {approx = true} : vector<2x1xf32> -> vector<2x1xf32>
    %23 = vector.broadcast %22 : vector<2x1xf32> to vector<2x256xf32>
    %24 = arith.mulf %20, %23 : vector<2x256xf32>
    %25 = arith.truncf %24 : vector<2x256xf32> to vector<2x256xbf16>
    %c0_10 = arith.constant 0 : index
    %c0_11 = arith.constant 0 : index
    %26 = vector.load %arg4[%c0_10, %c0_11] : memref<256x128xbf16, #tpu.memory_space<vmem>>, vector<256x128xbf16>
    %cst_12 = arith.constant dense<0.000000e+00> : vector<2x128xf32>
    %27 = tpu.matmul %25, %26, %cst_12 {dimension_numbers = #tpu.dot_dimension_numbers<[1], [0], [0], [1], [0, 0, 1, 1], [], []>} : vector<2x256xbf16>, vector<256x128xbf16>, vector<2x128xf32> -> vector<2x128xf32>
    %c0_13 = arith.constant 0 : index
    %c0_14 = arith.constant 0 : index
    %28 = vector.load %arg5[%c0_13, %c0_14] : memref<1x128xf32, #tpu.memory_space<vmem>>, vector<1x128xf32>
    %29 = vector.broadcast %28 : vector<1x128xf32> to vector<2x128xf32>
    %30 = arith.addf %27, %29 : vector<2x128xf32>
    %c0_15 = arith.constant 0 : index
    %c0_16 = arith.constant 0 : index
    %c0_17 = arith.constant 0 : index
    %31 = vector.load %arg6[%c0_15, %c0_16, %c0_17] : memref<1x2x128xf32, #tpu.memory_space<vmem>>, vector<1x2x128xf32>
    %32 = vector.shape_cast %31 : vector<1x2x128xf32> to vector<2x128xf32>
    %33 = vector.shape_cast %30 : vector<2x128xf32> to vector<1x2x128xf32>
    tpu.vector_store %arg6[%c0_15, %c0_16, %c0_17], %33 {strides = array<i32>} : memref<1x2x128xf32, #tpu.memory_space<vmem>>, vector<1x2x128xf32>,
    return
  }
  func.func @transform_0(%arg0: i32) -> (i32, i32, i32) {
    %c0_i32 = arith.constant 0 : i32
    %c0_i32_0 = arith.constant 0 : i32
    %c0_i32_1 = arith.constant 0 : i32
    return %arg0, %c0_i32, %c0_i32_0 : i32, i32, i32
  }
  func.func @transform_1(%arg0: i32) -> (i32, i32) {
    %c0_i32 = arith.constant 0 : i32
    %c0_i32_0 = arith.constant 0 : i32
    %c0_i32_1 = arith.constant 0 : i32
    return %c0_i32, %c0_i32_0 : i32, i32
  }
  func.func @transform_2(%arg0: i32) -> (i32, i32) {
    %c0_i32 = arith.constant 0 : i32
    %c0_i32_0 = arith.constant 0 : i32
    %c0_i32_1 = arith.constant 0 : i32
    return %c0_i32, %c0_i32_0 : i32, i32
  }
  func.func @transform_3(%arg0: i32) -> (i32, i32) {
    %c0_i32 = arith.constant 0 : i32
    %c0_i32_0 = arith.constant 0 : i32
    %c0_i32_1 = arith.constant 0 : i32
    return %c0_i32, %c0_i32_0 : i32, i32
  }
  func.func @transform_4(%arg0: i32) -> (i32, i32) {
    %c0_i32 = arith.constant 0 : i32
    %c0_i32_0 = arith.constant 0 : i32
    %c0_i32_1 = arith.constant 0 : i32
    return %c0_i32, %c0_i32_0 : i32, i32
  }
  func.func @transform_5(%arg0: i32) -> (i32, i32, i32) {
    %c0_i32 = arith.constant 0 : i32
    %c0_i32_0 = arith.constant 0 : i32
    %c0_i32_1 = arith.constant 0 : i32
    return %arg0, %c0_i32, %c0_i32_0 : i32, i32, i32
  }
}

</mosaic_0001>

<bundles_post_ra>
// kernel: tpu_custom_call.1
= control target key start
LH: loop header
LB: loop body
LE: loop exit
PB: predicated region body
PF: predicated region fallthrough
CT: control target
= control target key end

     0   :  { %10 = vsyncpa [#allocation3], 0  ;;  %s1641_s0 = inlined_call_operand.hbm [shape: bf16[2,32,256], index: 0, kind: input, shape index: {}]   ;;  %s1642_s1 = inlined_call_operand.hbm [shape: bf16[256,256], index: 1, kind: input, shape index: {}]   ;;  %s1643_s2 = inlined_call_operand.vmem [shape: f32[1,256], index: 2, kind: input, shape index: {}]   ;;  %s1644_s3 = inlined_call_operand.hbm [shape: bf16[256,128], index: 3, kind: input, shape index: {}]   ;;  %s1645_s4 = inlined_call_operand.vmem [shape: f32[1,128], index: 4, kind: input, shape index: {}]   ;;  %s1646_s5 = inlined_call_operand.hbm [shape: f32[2,2,128], index: 5, kind: output, shape index: {}]  }
   0x1   :  { %12 = vsyncpa [#allocation3 + $0x1], 0 }
   0x2   :  { %13 = vsyncpa [#allocation6], 0 }
   0x3   :  { %14 = vsyncpa [#allocation4], 0 }
   0x4   :  { %16 = vsyncpa [#allocation4 + $0x1], 0  ;;  %s1418_s18 = smov 0   ;;  %s1420_s19 = smov 0  }
   0x5   :  { %s1422_s20 = smov 0   ;;  %s1424_s21 = smov 0  }
   0x6 LB: > { %s1439_s22 = sadd.s32 4294967295, %s1378_s21   ;;  %s970_s23 = sadd.s32 4294967294, %s1378_s21   ;;  %s1378_s21 = sphi %s1424_s21, %s1669_s21   ;;  %s1374_s20 = sphi %s1422_s20, %s1668_s20   ;;  %s1370_s19 = sphi %s1420_s19, %s1667_s19   ;;  %s1366_s18 = sphi %s1418_s18, %s1666_s18  }
   0x7   : > { %p42_p0 = scmp.ne.s32.totalorder %s1370_s19, %s1366_s18  ;;  %p1647_p1 = scmp.eq.s32.totalorder %s1439_s22, 0 }
   0x8   : > { %p150_p2 = scmp.eq.s32.totalorder %s1439_s22, 1  ;;  %p156_p3 = scmp.eq.s32.totalorder %s970_s23, 1 }
   0x9   : > { %p1448_p4 = por %p1647_p1, %p42_p0  ;;  %p971_p5 = scmp.ge.s32.totalorder %s1378_s21, 1 }
   0xa   : > { %p1453_p6 = por %p156_p3, %p42_p0  ;;  %p163_p7 = scmp.lt.s32.totalorder %s1378_s21, 3 }
   0xb   : > { %s1652_s24 = scalar_select %p1448_p4, 1, 0 }
   0xc   : > { %s1653_s25 = scalar_select %p1453_p6, 1, 0 }
   0xd   : > { %p1458_p8 = pnand %p971_p5, %p163_p7  ;;  %s1380_s27 = smov [#allocation5]  }
   0xe   : > { %s175_s28 = sshll.u32 %s1380_s27, 4  ;;  %s1381_s30 = smov [#allocation7]   ;;  %s176_s28 = int_to_ptr.vmem [resolvable:$true] %s175_s28 }
   0xf   : > { %s1654_s26 = scalar_select %p1458_p8, 1, 0 }
  0x10   : > { %p1075_p9 = pneg %p1458_p8  ;;  %s191_s6 = sshll.u32 %s1381_s30, 4  ;;  %s192_s6 = int_to_ptr.vmem [resolvable:$true] %s191_s6 }
  0x11   : > { %s1241_s7 = scalar_lea.vmem %s176_s28, 4096  ;;  %p1249_p5 = scmp.lt.s32.totalorder %s176_s28, %s176_s28 }
  0x12   : > { %p1467_p11 = pnand %p1075_p9, %p1647_p1  ;;  %p1242_p13 = scmp.ne.s32.totalorder %s176_s28, %s1241_s7 }
  0x13   : > { %p1250_p7 = scmp.lt.s32.totalorder %s1241_s7, %s1241_s7 }
  0x14   : > { %p1232_p12 = pneg %p1467_p11 }
  0x15   : > { %p1251_p10 = por %p1250_p7, %p1249_p5 }
  0x16   : > { %p1244_p0 = pnand %p1242_p13, %p1232_p12 }
  0x18   : > { %p1245_p3 = pneg %p1244_p0 }
  0x1a   : > { %p1252_p9 = pnand %p1251_p10, %p1245_p3 }
  0x1c   : > { %1255 = shalt.err (!%p1252_p9)
}
  0x1d   : > { %s1648_s8 = smov 128   ;;  %s1383_s9 = smov 8  }
  0x1e   : > { %1078 = dma.hbm_to_vmem [thread:$0]  (!%p1467_p11), %s1642_s1, 4096, %s176_s28, [#allocation6], %s1648_s8, %s1648_s8, %s1383_s9  }
  0x1f   : > { %s1267_s12 = scalar_lea.vmem %s192_s6, 2048  ;;  %p1275_p10 = scmp.lt.s32.totalorder %s192_s6, %s192_s6 }
  0x20   : > { %p1268_p13 = scmp.ne.s32.totalorder %s192_s6, %s1267_s12  ;;  %p1276_p3 = scmp.lt.s32.totalorder %s1267_s12, %s1267_s12 }
  0x22   : > { %p1270_p0 = pnand %p1268_p13, %p1232_p12  ;;  %p1277_p7 = por %p1276_p3, %p1275_p10 }
  0x24   : > { %p1271_p5 = pneg %p1270_p0 }
  0x26   : > { %p1278_p9 = pnand %p1277_p7, %p1271_p5 }
  0x28   : > { %1281 = shalt.err (!%p1278_p9)
}
  0x29   : > { %s1384_s13 = smov 64   ;;  %s1385_s14 = smov 4  }
  0x2a   : > { %1081 = dma.hbm_to_vmem [thread:$0]  (!%p1467_p11), %s1644_s3, 2048, %s192_s6, [#allocation6], %s1384_s13, %s1384_s13, %s1385_s14  }
  0x2b   : > { %s1493_s17 = sadd.s32 1, %s1378_s21   ;;  %s29_s27 = sadd.s32 1, %s1374_s20 }
  0x2c   : > { %s26_s23 = ssub.s32 %s1378_s21, %s1493_s17  ;;  %p36_p13 = scmp.ne.s32.totalorder %s1374_s20, %s1370_s19 }
  0x2d   : > { %p27_p12 = scmp.eq.s32.totalorder %s26_s23, 0  ;;  %p37_p0 = scmp.eq.s32.totalorder %s1378_s21, 0 }
  0x2e   : > { %p1506_p10 = por %p150_p2, %p36_p13  ;;  %p1092_p3 = scmp.lt.s32.totalorder %s1378_s21, 2 }
  0x2f   : > { %s1502_s28 = scalar_select %p27_p12, %s1374_s20, %s29_s27  }
  0x30   : > { %p38_p5 = por %p37_p0, %p36_p13  ;;  %s208_s29 = sand.u32 1, %s1374_s20  }
  0x31   : > { %s1656_s30 = scalar_select %p1506_p10, 1, 0 }
  0x32   : > { %s975_s7 = sshll.u32 %s208_s29, 5  ;;  %s1040_s6 = sshll.u32 %s1378_s21, 9 }
  0x33   : > { %s1516_s12 = scalar_lea.hbm %s1641_s0, %s1040_s6  ;;  %s212_s13 = scalar_lea.vmem [#allocation2], %s975_s7 }
  0x34   : > { %s219_s14 = sshll.u32 %s212_s13, 4  ;;  %p1520_p2 = pnand %p1092_p3, %p38_p5  ;;  %s1518_s14 = int_to_ptr.vmem [resolvable:$true] %s219_s14 }
  0x35   : > { %s1524_s16 = scalar_lea.sflag [#allocation3], %s208_s29  ;;  %s1282_s23 = scalar_lea.hbm %s1516_s12, 512 }
  0x36   : > { %p1283_p11 = scmp.ne.s32.totalorder %s1516_s12, %s1282_s23  ;;  %p1284_p7 = pneg %p1520_p2 }
  0x37   : > { %s1287_s7 = scalar_lea.hbm %s1641_s0, 1024  ;;  %p1288_p13 = scmp.lt.s32.totalorder %s1516_s12, %s1641_s0 }
  0x38   : > { %p1285_p9 = pnand %p1284_p7, %p1283_p11  ;;  %p1289_p0 = scmp.lt.s32.totalorder %s1287_s7, %s1282_s23 }
  0x3a   : > { %p1286_p12 = pneg %p1285_p9  ;;  %p1290_p5 = por %p1289_p0, %p1288_p13 }
  0x3c   : > { %p1291_p3 = pnand %p1290_p5, %p1286_p12 }
  0x3e   : > { %1294 = shalt.err (!%p1291_p3)
}
  0x3f   : > { %s1295_s29 = scalar_lea.vmem %s1518_s14, 512  ;;  %s1386_s13 = smov [#allocation2]  }
  0x40   : > { %p1296_p1 = scmp.ne.s32.totalorder %s1518_s14, %s1295_s29  ;;  %s1300_s8 = sshll.u32 %s1386_s13, 4  ;;  %s1301_s8 = int_to_ptr.vmem [resolvable:$false] %s1300_s8 }
  0x41   : > { %s1302_s27 = scalar_lea.vmem %s1301_s8, 1024  ;;  %p1303_p9 = scmp.lt.s32.totalorder %s1518_s14, %s1301_s8 }
  0x42   : > { %p1298_p6 = pnand %p1296_p1, %p1284_p7  ;;  %p1304_p10 = scmp.lt.s32.totalorder %s1302_s27, %s1295_s29 }
  0x44   : > { %p1299_p11 = pneg %p1298_p6  ;;  %p1305_p4 = por %p1304_p10, %p1303_p9 }
  0x46   : > { %p1306_p8 = pnand %p1305_p4, %p1299_p11 }
  0x48   : > { %1309 = shalt.err (!%p1306_p8)
}
  0x49   : > { %s1658_s23 = smov 128   ;;  %p1659_p1 = scmp.ne.s32.totalorder %s1654_s26, 0 }
  0x4a   : > { %1085 = dma.hbm_to_vmem [thread:$0]  (!%p1520_p2), %s1516_s12, 512, %s1518_s14, %s1524_s16, %s1658_s23, %s1658_s23, %s1383_s9  }
  0x4b   : > { %231 = sbr.rel (%p1659_p1) target bundleno = 795 (0x31b), region = 40  ;;  %s1551_s6 = sand.u32 (!%p1659_p1), 1, %s1370_s19  }
  0x4c   : > { %s979_s8 = sshll.u32 (!%p1659_p1), %s1551_s6, 5  ;;  %s234_s7 = scalar_lea.sflag (!%p1659_p1), [#allocation3], %s1551_s6 }
  0x4d   : > { %s1555_s10 = scalar_lea.vmem (!%p1659_p1), [#allocation2], %s979_s8  ;;  %p1660_p4 = scmp.ne.s32.totalorder (!%p1659_p1), %s1652_s24, 0 }
  0x50   : > { %1353 = dma.done.wait (%p1660_p4), %s234_s7, 512  }
  0x51   : > { %1355 = vsyncadd (%p1660_p4), %s234_s7, 4294966784  ;;  %p1661_p6 = scmp.eq.s32.totalorder %s1439_s22, 0 }
  0x53   : > { %1357 = dma.done.wait (%p1661_p6), [#allocation6], 6144   ;;  %p1662_p8 = pmov %p1661_p6 }
  0x54   : > { %v1134_v0 = vld [vmem:[#allocation5 + $0x74] ss:$8 sps:$4 sm:$0xff]   ;;  %v1136_v1 = vld [vmem:[#allocation5 + $0x70] ss:$8 sps:$4 sm:$0xff]   ;;  %v1137_v2 = vld [vmem:[#allocation5 + $0x64] ss:$8 sps:$4 sm:$0xff]   ;;  %v552_v41 = vlaneseq }
  0x55   : > { %1359 = vsyncadd (%p1662_p8), [#allocation6], 4294961152  ;;  %489 = vmatprep.subr.bf16.mxu0 %v1134_v0  ;;  %v1139_v3 = vld [vmem:[#allocation5 + $0x60] ss:$8 sps:$4 sm:$0xff]   ;;  %v1140_v4 = vld [vmem:[#allocation5 + $0x54] ss:$8 sps:$4 sm:$0xff]  }
  0x56   : > { %490 = vmatpush1.bf16.msra.mxu0 %v1136_v1  ;;  %v1142_v5 = vld [vmem:[#allocation5 + $0x50] ss:$8 sps:$4 sm:$0xff]   ;;  %v1143_v6 = vld [vmem:[#allocation5 + $0x44] ss:$8 sps:$4 sm:$0xff]   ;;  %v1145_v7 = vld [vmem:[#allocation5 + $0x40] ss:$8 sps:$4 sm:$0xff]  }
  0x57   : > { %491 = vmatprep.subr.bf16.mxu0 %v1137_v2  ;;  %v1146_v8 = vld [vmem:[#allocation5 + $0x34] ss:$8 sps:$4 sm:$0xff]   ;;  %v1148_v9 = vld [vmem:[#allocation5 + $0x30] ss:$8 sps:$4 sm:$0xff]   ;;  %v1149_v10 = vld [vmem:[#allocation5 + $0x24] ss:$8 sps:$4 sm:$0xff]  }
  0x58   : > { %v1151_v11 = vld [vmem:[#allocation5 + $0x20] ss:$8 sps:$4 sm:$0xff]   ;;  %v1152_v12 = vld [vmem:[#allocation5 + $0x14] ss:$8 sps:$4 sm:$0xff]   ;;  %v1154_v15 = vld [vmem:[#allocation5 + $0x10] ss:$8 sps:$4 sm:$0xff]  }
  0x59   : > { %v1566_v13 = vld [vmem:[%s1555_s10] sm:$0xff]  ;;  %v1569_v14 = vld [vmem:[%s1555_s10 + $0x8] sm:$0xff]  ;;  %v1158_v19 = vld [vmem:[#allocation5 + $0xf4] ss:$8 sps:$4 sm:$0xff]   ;;  %v553_v44 = vshrl.u32 %v552_v41, 7  ;;  %vm723_vm0 = vcmask 1041409  }
  0x5a   : > { %492 = vmatpush1.bf16.msra.mxu0 %v1139_v3  ;;  %v1155_v16 = vld [vmem:[#allocation5 + $0x4] ss:$8 sps:$4 sm:$0xff]   ;;  %v984_v17 = vcombine.high %v1566_v13, %v1569_v14  ;;  %v1157_v18 = vld [vmem:[#allocation5] ss:$8 sps:$4 sm:$0xff]   ;;  %v1160_v20 = vld [vmem:[#allocation5 + $0xf0] ss:$8 sps:$4 sm:$0xff]   ;;  %v983_v37 = vcombine.low %v1566_v13, %v1569_v14 }
  0x5b   : > { %493 = vmatprep.subr.bf16.mxu0 %v1140_v4  ;;  %v1161_v21 = vld [vmem:[#allocation5 + $0xe4] ss:$8 sps:$4 sm:$0xff]   ;;  %v1163_v22 = vld [vmem:[#allocation5 + $0xe0] ss:$8 sps:$4 sm:$0xff]   ;;  %v1164_v23 = vld [vmem:[#allocation5 + $0xd4] ss:$8 sps:$4 sm:$0xff]  }
  0x5c   : > { %521 = vmatprep.mubr.bf16.mxu0 %v984_v17  ;;  %v1166_v24 = vld [vmem:[#allocation5 + $0xd0] ss:$8 sps:$4 sm:$0xff]   ;;  %v1167_v25 = vld [vmem:[#allocation5 + $0xc4] ss:$8 sps:$4 sm:$0xff]   ;;  %v1169_v26 = vld [vmem:[#allocation5 + $0xc0] ss:$8 sps:$4 sm:$0xff]  }
  0x5d   : > { %v1170_v27 = vld [vmem:[#allocation5 + $0xb4] ss:$8 sps:$4 sm:$0xff]   ;;  %v1172_v28 = vld [vmem:[#allocation5 + $0xb0] ss:$8 sps:$4 sm:$0xff]   ;;  %v1173_v29 = vld [vmem:[#allocation5 + $0xa4] ss:$8 sps:$4 sm:$0xff]  }
  0x5e   : > { %494 = vmatpush1.bf16.msra.mxu0 %v1142_v5  ;;  %v1175_v30 = vld [vmem:[#allocation5 + $0xa0] ss:$8 sps:$4 sm:$0xff]   ;;  %v1176_v31 = vld [vmem:[#allocation5 + $0x94] ss:$8 sps:$4 sm:$0xff]   ;;  %v1178_v32 = vld [vmem:[#allocation5 + $0x90] ss:$8 sps:$4 sm:$0xff]  }
  0x5f   : > { %495 = vmatprep.subr.bf16.mxu0 %v1143_v6  ;;  %v1179_v33 = vld [vmem:[#allocation5 + $0x84] ss:$8 sps:$4 sm:$0xff]   ;;  %v1181_v34 = vld [vmem:[#allocation5 + $0x80] ss:$8 sps:$4 sm:$0xff]   ;;  %v1574_v35 = vld [vmem:[%s1555_s10 + $0x10] sm:$0xff]  ;;  %v554_v47 = vsub.s32 0, %v553_v44 }
  0x60   : > { %v1577_v36 = vld [vmem:[%s1555_s10 + $0x18] sm:$0xff]  ;;  %v558_v48 = vsub.s32 1, %v553_v44  ;;  %v550_v50 = vld [vmem:[%s1643_s2] sm:$0x3]  ;;  %v1190_v17 = vld [vmem:[#allocation7 + $0x68] sm:$0xff]   ;;  %s982_s9 = sshll.u32 %s1551_s6, 1 }
  0x61   : > { %v986_v38 = vcombine.high %v1574_v35, %v1577_v36  ;;  %v985_v39 = vcombine.low %v1574_v35, %v1577_v36  ;;  %v555_v52 = vrot.slane %v550_v50, %v554_v47  ;;  %s1037_s15 = sshll.u32 %s1439_s22, 5  ;;  %s271_s16 = scalar_lea.vmem [#allocation8], %s982_s9 }
  0x62   : > { %496 = vmatpush1.bf16.msra.mxu0 %v1145_v7  ;;  %v559_v53 = vrot.slane %v550_v50, %v558_v48  ;;  %s881_s11 = sshll.u32 %s271_s16, 4  ;;  %s1604_s27 = scalar_lea.hbm %s1646_s5, %s1037_s15  ;;  %s882_s11 = int_to_ptr.vmem [resolvable:$true] %s881_s11 }
  0x63   : > { %497 = vmatprep.subr.bf16.mxu0 %v1146_v8  ;;  %s868_s23 = scalar_lea.sflag [#allocation4], %s1551_s6  ;;  %s1310_s8 = scalar_lea.vmem %s882_s11, 32 }
  0x64   : > { %p1311_p10 = scmp.ne.s32.totalorder %s882_s11, %s1310_s8  ;;  %p1663_p2 = scmp.ne.s32.totalorder %s1656_s30, 0 }
  0x65   : > { %s1387_s22 = smov [#allocation8]  }
  0x66   : > { %498 = vmatpush1.bf16.msra.mxu0 %v1148_v9  ;;  %p1312_p7 = pnand %p1311_p10, %p1663_p2  ;;  %s1314_s7 = sshll.u32 %s1387_s22, 4  ;;  %s1315_s7 = int_to_ptr.vmem [resolvable:$false] %s1314_s7 }
  0x67   : > { %499 = vmatprep.subr.bf16.mxu0 %v1149_v10  ;;  %s1316_s10 = scalar_lea.vmem %s1315_s7, 64  ;;  %p1317_p13 = scmp.lt.s32.totalorder %s882_s11, %s1315_s7 }
  0x68   : > { %p1313_p12 = pneg %p1312_p7  ;;  %p1318_p0 = scmp.lt.s32.totalorder %s1316_s10, %s1310_s8 }
  0x6a   : > { %500 = vmatpush1.bf16.msra.mxu0 %v1151_v11  ;;  %v1186_v11 = vld [vmem:[#allocation7 + $0x78] sm:$0xff]   ;;  %p1319_p5 = por %p1318_p0, %p1317_p13 }
  0x6b   : > { %501 = vmatprep.subr.bf16.mxu0 %v1152_v12  ;;  %v1187_v12 = vld [vmem:[#allocation7 + $0x38] sm:$0xff]   ;;  %1041 = vmatprep.subr.bf16.mxu1 %v1186_v11 }
  0x6c   : > { %1042 = vmatpush3.bf16.msra.mxu1 %v1187_v12  ;;  %p1320_p3 = pnand %p1319_p5, %p1313_p12 }
  0x6e   : > { %502 = vmatpush1.bf16.msra.mxu0 %v1154_v15  ;;  %v1188_v15 = vld [vmem:[#allocation7 + $0x70] sm:$0xff]  }
  0x6f   : > { %503 = vmatprep.subr.bf16.mxu0 %v1155_v16  ;;  %v1189_v16 = vld [vmem:[#allocation7 + $0x30] sm:$0xff]   ;;  %1043 = vmatprep.subr.bf16.mxu1 %v1188_v15 }
  0x70   : > { %1044 = vmatpush3.bf16.msra.mxu1 %v1189_v16 }
  0x71   : > { %1045 = vmatprep.subr.bf16.mxu1 %v1190_v17 }
  0x72   : > { %504 = vmatpush1.bf16.msra.mxu0 %v1157_v18  ;;  %v1191_v18 = vld [vmem:[#allocation7 + $0x28] sm:$0xff]  }
  0x73   : > { %505 = vmatprep.subr.bf16.mxu0 %v1158_v19  ;;  %v1192_v19 = vld [vmem:[#allocation7 + $0x60] sm:$0xff]  }
  0x74   : > { %1046 = vmatpush3.bf16.msra.mxu1 %v1191_v18 }
  0x75   : > { %1047 = vmatprep.subr.bf16.mxu1 %v1192_v19 }
  0x76   : > { %506 = vmatpush2.bf16.msra.mxu0 %v1160_v20  ;;  %v1193_v20 = vld [vmem:[#allocation7 + $0x20] sm:$0xff]  }
  0x77   : > { %507 = vmatprep.subr.bf16.mxu0 %v1161_v21  ;;  %v1194_v21 = vld [vmem:[#allocation7 + $0x58] sm:$0xff]  }
  0x78   : > { %1048 = vmatpush3.bf16.msra.mxu1 %v1193_v20 }
  0x79   : > { %1049 = vmatprep.subr.bf16.mxu1 %v1194_v21 }
  0x7a   : > { %508 = vmatpush2.bf16.msra.mxu0 %v1163_v22  ;;  %v1195_v22 = vld [vmem:[#allocation7 + $0x18] sm:$0xff]  }
  0x7b   : > { %509 = vmatprep.subr.bf16.mxu0 %v1164_v23  ;;  %v1196_v23 = vld [vmem:[#allocation7 + $0x50] sm:$0xff]  }
  0x7c   : > { %1050 = vmatpush3.bf16.msra.mxu1 %v1195_v22 }
  0x7d   : > { %1051 = vmatprep.subr.bf16.mxu1 %v1196_v23 }
  0x7e   : > { %510 = vmatpush2.bf16.msra.mxu0 %v1166_v24  ;;  %v1197_v24 = vld [vmem:[#allocation7 + $0x10] sm:$0xff]  }
  0x7f   : > { %511 = vmatprep.subr.bf16.mxu0 %v1167_v25  ;;  %v1198_v25 = vld [vmem:[#allocation7 + $0x48] sm:$0xff]  }
  0x80   : > { %1052 = vmatpush3.bf16.msra.mxu1 %v1197_v24 }
  0x81   : > { %1053 = vmatprep.subr.bf16.mxu1 %v1198_v25 }
  0x82   : > { %512 = vmatpush2.bf16.msra.mxu0 %v1169_v26  ;;  %v1199_v26 = vld [vmem:[#allocation7 + $0x8] sm:$0xff]  }
  0x83   : > { %513 = vmatprep.subr.bf16.mxu0 %v1170_v27  ;;  %v1200_v27 = vld [vmem:[#allocation7 + $0x40] sm:$0xff]  }
  0x84   : > { %1054 = vmatpush3.bf16.msra.mxu1 %v1199_v26 }
  0x85   : > { %1055 = vmatprep.subr.bf16.mxu1 %v1200_v27 }
  0x86   : > { %514 = vmatpush2.bf16.msra.mxu0 %v1172_v28  ;;  %v1201_v28 = vld [vmem:[#allocation7] sm:$0xff]  }
  0x87   : > { %515 = vmatprep.subr.bf16.mxu0 %v1173_v29 }
  0x88   : > { %1056 = vmatpush3.bf16.msra.mxu1 %v1201_v28 }
  0x8a   : > { %516 = vmatpush2.bf16.msra.mxu0 %v1175_v30 }
  0x8b   : > { %517 = vmatprep.subr.bf16.mxu0 %v1176_v31 }
  0x8e   : > { %518 = vmatpush2.bf16.msra.mxu0 %v1178_v32 }
  0x8f   : > { %519 = vmatprep.subr.bf16.mxu0 %v1179_v33 }
  0x92   : > { %520 = vmatpush2.bf16.msra.mxu0 %v1181_v34 }
  0x95   : > { %522 = vmatmul.mubr.bf16.vlgmr.msra.gmra.mxu0 %v983_v37 }
  0x96   : > { %531 = vmatprep.mubr.bf16.mxu0 %v986_v38 }
  0x9d   : > { %532 = vmatmul.mubr.bf16.gmra.mxu0 %v985_v39 }
 0x155   : > { %v523_v40 = vpop.f32.mrf.mxu0 }
 0x156   : > { %1202 = vtanh.f32 %v523_v40 }
 0x157   : > { %v525_v42 = vpop.f32.mrf.mxu0 }
 0x158   : > { %1204 = vtanh.f32 %v525_v42 }
 0x159   : > { %v527_v43 = vpop.f32.mrf.mxu0 }
 0x15a   : > { %1206 = vtanh.f32 %v527_v43 }
 0x15b   : > { %v529_v45 = vpop.f32.mrf.mxu0 }
 0x15c   : > { %1208 = vtanh.f32 %v529_v45 }
 0x15d   : > { %v533_v46 = vpop.f32.mrf.mxu0 }
 0x15e   : > { %1210 = vtanh.f32 %v533_v46 }
 0x15f   : > { %v535_v49 = vpop.f32.mrf.mxu0 }
 0x160   : > { %1212 = vtanh.f32 %v535_v49 }
 0x161   : > { %v537_v51 = vpop.f32.mrf.mxu0 }
 0x162   : > { %1214 = vtanh.f32 %v537_v51 }
 0x163   : > { %v1203_v54 = vpop.eup %1202  ;;  %v539_v55 = vpop.f32.mrf.mxu0 }
 0x164   : > { %1216 = vtanh.f32 %v539_v55  ;;  %v562_v57 = vmul.f32 %v1203_v54, %v555_v52 }
 0x165   : > { %v1205_v56 = vpop.eup %1204 }
 0x166   : > { %v563_v58 = vmul.f32 %v1205_v56, %v559_v53 }
 0x167   : > { %v1207_v59 = vpop.eup %1206 }
 0x168   : > { %v570_v60 = vadd.f32 %v563_v58, %v562_v57  ;;  %v564_v62 = vmul.f32 %v1207_v59, %v555_v52  ;;  %v608_v57 = vunpack.c.l.bf16 %v1566_v13  ;;  %v609_v58 = vunpack.c.h.bf16 %v1566_v13 }
 0x169   : > { %v1209_v61 = vpop.eup %1208  ;;  %v610_v59 = vunpack.c.l.bf16 %v1569_v14  ;;  %v615_v13 = vunpack.c.h.bf16 %v1577_v36 }
 0x16a   : > { %571 = vadd.xlane.f32.xlu0 %v570_v60  ;;  %v565_v63 = vmul.f32 %v1209_v61, %v559_v53  ;;  %v611_v60 = vunpack.c.h.bf16 %v1569_v14 }
 0x16b   : > { %v1211_v0 = vpop.eup %1210 }
 0x16c   : > { %v573_v1 = vadd.f32 %v565_v63, %v564_v62  ;;  %v566_v3 = vmul.f32 %v1211_v0, %v555_v52 }
 0x16d   : > { %v1213_v2 = vpop.eup %1212 }
 0x16e   : > { %574 = vadd.xlane.f32.xlu0 %v573_v1  ;;  %v567_v4 = vmul.f32 %v1213_v2, %v559_v53 }
 0x16f   : > { %v1215_v5 = vpop.eup %1214 }
 0x170   : > { %v576_v6 = vadd.f32 %v567_v4, %v566_v3  ;;  %v568_v8 = vmul.f32 %v1215_v5, %v555_v52 }
 0x171   : > { %v1217_v7 = vpop.eup %1216 }
 0x172   : > { %577 = vadd.xlane.f32.xlu1 %v576_v6  ;;  %v569_v9 = vmul.f32 %v1217_v7, %v559_v53  ;;  %v612_v7 = vunpack.c.l.bf16 %v1574_v35 }
 0x174   : > { %v579_v10 = vadd.f32 %v569_v9, %v568_v8  ;;  %v613_v8 = vunpack.c.h.bf16 %v1574_v35 }
 0x176   : > { %580 = vadd.xlane.f32.xlu1 %v579_v10  ;;  %v614_v10 = vunpack.c.l.bf16 %v1577_v36 }
 0x1f3   : > { %v572_v29 = vpop.xlane.xlu0 %571 }
 0x1f7   : > { %v575_v30 = vpop.xlane.xlu0 %574 }
 0x1f8   : > { %v582_v31 = vmax.f32 %v572_v29, %v575_v30 }
 0x1fa   : > { %v583_v32 = vrot.slane %v582_v31, 4 }
 0x1fb   : > { %v578_v33 = vpop.xlane.xlu1 %577 }
 0x1fc   : > { %v584_v34 = vmax.f32 %v582_v31, %v583_v32 }
 0x1fe   : > { %v585_v37 = vrot.slane %v584_v34, 2 }
 0x1ff   : > { %v581_v38 = vpop.xlane.xlu1 %580 }
 0x200   : > { %v586_v39 = vmax.f32 %v584_v34, %v585_v37  ;;  %v589_v40 = vmax.f32 %v578_v33, %v581_v38 }
 0x202   : > { %v587_v41 = vrot.slane %v586_v39, 1  ;;  %v590_v42 = vrot.slane %v589_v40, 4 }
 0x204   : > { %v588_v43 = vmax.f32 %v586_v39, %v587_v41  ;;  %v591_v44 = vmax.f32 %v589_v40, %v590_v42 }
 0x206   : > { %v596_v45 = vsub.f32 %v572_v29, %v588_v43  ;;  %v597_v46 = vsub.f32 %v575_v30, %v588_v43  ;;  %v592_v47 = vrot.slane %v591_v44, 2 }
 0x208   : > { %v600_v48 = vmul.f32 1.442695, %v596_v45  ;;  %v602_v49 = vmul.f32 1.442695, %v597_v46  ;;  %v593_v50 = vmax.f32 %v591_v44, %v592_v47 }
 0x20a   : > { %1218 = vpow2.f32 %v600_v48  ;;  %v594_v51 = vrot.slane %v593_v50, 1 }
 0x20b   : > { %1220 = vpow2.f32 %v602_v49 }
 0x20c   : > { %v595_v52 = vmax.f32 %v593_v50, %v594_v51 }
 0x20e   : > { %v598_v53 = vsub.f32 %v578_v33, %v595_v52  ;;  %v599_v54 = vsub.f32 %v581_v38, %v595_v52 }
 0x210   : > { %v604_v55 = vmul.f32 1.442695, %v598_v53  ;;  %v606_v56 = vmul.f32 1.442695, %v599_v54 }
 0x212   : > { %1222 = vpow2.f32 %v604_v55 }
 0x213   : > { %1224 = vpow2.f32 %v606_v56 }
 0x217   : > { %v1219_v61 = vpop.eup %1218 }
 0x218   : > { %v1221_v62 = vpop.eup %1220  ;;  %v617_v63 = vmul.f32 %v1219_v61, %v609_v58  ;;  %v616_v0 = vmul.f32 %v1219_v61, %v608_v57 }
 0x219   : > { %v619_v1 = vmul.f32 %v1221_v62, %v611_v60  ;;  %v652_v2 = vadd.f32 %v1221_v62, %v1219_v61  ;;  %v618_v3 = vmul.f32 %v1221_v62, %v610_v59 }
 0x21b   : > { %v631_v4 = vadd.f32 %v619_v1, %v617_v63  ;;  %v653_v5 = vrot.slane %v652_v2, 4  ;;  %v624_v6 = vadd.f32 %v618_v3, %v616_v0 }
 0x21d   : > { %v654_v9 = vadd.f32 %v653_v5, %v652_v2  ;;  %v632_v20 = vrot.slane %v631_v4, 4  ;;  %v625_v25 = vrot.slane %v624_v6, 4 }
 0x21f   : > { %v1223_v14 = vpop.eup %1222  ;;  %v655_v11 = vrot.slane %v654_v9, 2  ;;  %v633_v28 = vadd.f32 %v632_v20, %v631_v4  ;;  %v626_v30 = vadd.f32 %v625_v25, %v624_v6 }
 0x220   : > { %v1225_v12 = vpop.eup %1224  ;;  %v621_v15 = vmul.f32 %v1223_v14, %v613_v8  ;;  %v620_v16 = vmul.f32 %v1223_v14, %v612_v7 }
 0x221   : > { %v623_v17 = vmul.f32 %v1225_v12, %v615_v13  ;;  %v656_v18 = vadd.f32 %v655_v11, %v654_v9  ;;  %v659_v19 = vadd.f32 %v1225_v12, %v1223_v14  ;;  %v622_v21 = vmul.f32 %v1225_v12, %v614_v10  ;;  %v1019_v9 = vld [vmem:[%s1645_s4] ss:$0 sm:$0xff] }
 0x222   : > { %v634_v33 = vrot.slane %v633_v28, 2  ;;  %v627_v38 = vrot.slane %v626_v30, 2 }
 0x223   : > { %v645_v22 = vadd.f32 %v623_v17, %v621_v15  ;;  %v657_v23 = vrot.slane %v656_v18, 1  ;;  %v660_v24 = vrot.slane %v659_v19, 4  ;;  %v638_v35 = vadd.f32 %v622_v21, %v620_v16 }
 0x224   : > { %v635_v41 = vadd.f32 %v634_v33, %v633_v28  ;;  %v628_v43 = vadd.f32 %v627_v38, %v626_v30 }
 0x225   : > { %v658_v26 = vadd.f32 %v657_v23, %v656_v18  ;;  %v661_v27 = vadd.f32 %v660_v24, %v659_v19  ;;  %v646_v29 = vrot.slane %v645_v22, 4  ;;  %v639_v31 = vrot.slane %v638_v35, 4 }
 0x226   : > { %v636_v45 = vrot.slane %v635_v41, 1  ;;  %v629_v47 = vrot.slane %v628_v43, 1 }
 0x227   : > { %v662_v36 = vrot.slane %v661_v27, 2  ;;  %1226 = vrcp.f32 %v658_v26  ;;  %v647_v34 = vadd.f32 %v646_v29, %v645_v22  ;;  %v640_v39 = vadd.f32 %v639_v31, %v638_v35 }
 0x228   : > { %v637_v50 = vadd.f32 %v636_v45, %v635_v41  ;;  %v630_v52 = vadd.f32 %v629_v47, %v628_v43 }
 0x229   : > { %v663_v32 = vadd.f32 %v662_v36, %v661_v27  ;;  %v648_v42 = vrot.slane %v647_v34, 2  ;;  %v641_v44 = vrot.slane %v640_v39, 2 }
 0x22b   : > { %v664_v37 = vrot.slane %v663_v32, 1  ;;  %v649_v46 = vadd.f32 %v648_v42, %v647_v34  ;;  %v642_v48 = vadd.f32 %v641_v44, %v640_v39 }
 0x22d   : > { %v665_v40 = vadd.f32 %v664_v37, %v663_v32  ;;  %v650_v51 = vrot.slane %v649_v46, 1  ;;  %v643_v53 = vrot.slane %v642_v48, 1 }
 0x22f   : > { %1228 = vrcp.f32 %v665_v40  ;;  %v651_v56 = vadd.f32 %v650_v51, %v649_v46  ;;  %v644_v57 = vadd.f32 %v643_v53, %v642_v48 }
 0x234   : > { %v1227_v49 = vpop.eup %1226 }
 0x235   : > { %v669_v54 = vmul.f32 %v1227_v49, %v637_v50  ;;  %v668_v55 = vmul.f32 %v1227_v49, %v630_v52 }
 0x237   : > { %v673_v60 = vpack.c.bf16 %v669_v54, %v669_v54  ;;  %v672_v62 = vpack.c.bf16 %v668_v55, %v668_v55 }
 0x239   : > { %v720_v1 = vunpack.c.l.b16 %v673_v60  ;;  %v719_v3 = vunpack.c.l.b16 %v672_v62 }
 0x23c   : > { %v1229_v58 = vpop.eup %1228 }
 0x23d   : > { %v671_v59 = vmul.f32 %v1229_v58, %v651_v56  ;;  %v670_v61 = vmul.f32 %v1229_v58, %v644_v57 }
 0x23f   : > { %v675_v63 = vpack.c.bf16 %v671_v59, %v671_v59  ;;  %v674_v0 = vpack.c.bf16 %v670_v61, %v670_v61 }
 0x241   : > { %v722_v2 = vunpack.c.l.b16 %v675_v63  ;;  %v721_v4 = vunpack.c.l.b16 %v674_v0 }
 0x243   : > { %v725_v5 = vsel %vm723_vm0, %v722_v2, %v720_v1  ;;  %v724_v6 = vsel %vm723_vm0, %v721_v4, %v719_v3 }
 0x244   : > { %v727_v7 = vpack.c.b16 %v725_v5, %v725_v5  ;;  %v726_v8 = vpack.c.b16 %v724_v6, %v724_v6 }
 0x246   : > { %858 = vmatprep.mubr.bf16.mxu1 %v727_v7 }
 0x247   : > { %859 = vmatmul.mubr.bf16.vlgmr.msra.gmra.mxu1 %v726_v8 }
 0x307   : > { %v1057_v13 = vpop.f32.mrf.mxu1 }
 0x309   : > { %v1058_v10 = vpop.f32.mrf.mxu1 }
 0x30a   : > { %v1059_v14 = vadd.f32 %v1058_v10, %v1057_v13 }
 0x30b   : > { %v1060_v11 = vpop.f32.mrf.mxu1 }
 0x30c   : > { %v861_v12 = vadd.f32 %v1059_v14, %v1019_v9 }
 0x30d   : > { %v1061_v15 = vpop.f32.mrf.mxu1 }
 0x30e   : > { %866 = vst [vmem:[%s271_s16] sm:$0x3] %v861_v12 }
 0x30f   : > { %1323 = shalt.err (!%p1320_p3)
}
 0x310   : > { %s1324_s24 = scalar_lea.hbm %s1604_s27, 32  ;;  %s1328_s9 = scalar_lea.hbm %s1646_s5, 64 }
 0x311   : > { %p1325_p11 = scmp.ne.s32.totalorder %s1604_s27, %s1324_s24  ;;  %p1329_p4 = scmp.lt.s32.totalorder %s1604_s27, %s1646_s5 }
 0x312   : > { %p1330_p6 = scmp.lt.s32.totalorder %s1328_s9, %s1324_s24 }
 0x313   : > { %p1326_p9 = pnand %p1325_p11, %p1663_p2 }
 0x314   : > { %p1331_p8 = por %p1330_p6, %p1329_p4 }
 0x315   : > { %p1327_p1 = pneg %p1326_p9 }
 0x317   : > { %p1332_p10 = pnand %p1331_p8, %p1327_p1 }
 0x319   : > { %1335 = shalt.err (!%p1332_p10)
}
 0x31a   : > { %1073 = dma.vmem_to_hbm [thread:$0]  (%p1663_p2), %s882_s11, 32, %s1604_s27, %s868_s23  }
 0x31b PF: > { %s893_s15 = sand.u32 1, %s1366_s18   ;;  %p1664_p7 = scmp.ne.s32.totalorder %s1653_s25, 0 }
 0x31c   : > { %p1665_p12 = scmp.ge.s32.totalorder %s1378_s21, 2  ;;  %s894_s16 = scalar_lea.sflag [#allocation4], %s893_s15 }
 0x31e   : > { %p1087_p13 = pnand %p1665_p12, %p1664_p7 }
 0x320   : > { %p1088_p0 = pneg %p1087_p13 }
 0x322   : > { %1361 = dma.done.wait (%p1088_p0), %s894_s16, 32  }
 0x323   : > { %1363 = vsyncadd (%p1088_p0), %s894_s16, 4294967264  ;;  %p19_p5 = scmp.ge.s32.totalorder %s1493_s17, 4   ;;  %s1666_s18 = smov %s1370_s19 }
 0x324   : > { %s1667_s19 = smov %s1374_s20  ;;  %s1668_s20 = smov %s1502_s28 }
 0x325   : > { %s1669_s21 = smov %s1493_s17  ;;  %21 = sbr.rel (!%p19_p5) target bundleno = 6 (0x6), region = 93 }
 0x32a   :  { %899 = vsyncpa [#allocation3], 1 }
 0x32b   :  { %901 = vsyncpa [#allocation3 + $0x1], 1 }
 0x32c   :  { %902 = vsyncpa [#allocation6], 1 }
 0x32d   :  { %903 = vsyncpa [#allocation4], 1 }
 0x32e   :  { %905 = vsyncpa [#allocation4 + $0x1], 1 }

</bundles_post_ra>
